<compile_context>
chip_gen: v7x
topology: tpu7x:2x2x1
jax: 0.10.0
libtpu: 0.0.40
codegen_flags: <defaults>
</compile_context>

<pallas_src>
import jax
import jax.numpy as jnp
import numpy as np
from jax.experimental import pallas as pl
from jax.experimental.pallas import tpu as pltpu


# ----------------------------------------------------------------------------
# Fused SqueezeExcitation kernel: one grid step == B_TILE images.
# ----------------------------------------------------------------------------
def _se_kernel(x_ref, w1_ref, b1_ref, w2_ref, b2_ref, o_ref):
    # x_ref block: (B_TILE, C, HW) -- NCHW-native, spatial (HW) on lanes.
    x = x_ref[...]                                     # stays in input dtype
    hw = x_ref.shape[-1]

    # Squeeze: AdaptiveAvgPool2d(1) == mean over spatial, f32 accumulation.
    pooled = jnp.sum(x, axis=-1, dtype=jnp.float32) * (1.0 / hw)     # (B, C)

    # Excite: fc1 (1x1 conv) -> ReLU -> fc2 (1x1 conv) -> Hardsigmoid.
    h = jnp.dot(pooled, w1_ref[...], preferred_element_type=jnp.float32)
    h = jnp.maximum(h + b1_ref[...], 0.0)                            # (B, S)
    s = jnp.dot(h, w2_ref[...], preferred_element_type=jnp.float32)
    s = s + b2_ref[...]                                              # (B, C)
    s = jnp.clip(s * (1.0 / 6.0) + 0.5, 0.0, 1.0)                    # Hardsigmoid

    # Scale: per-channel rescale of the input, broadcast along the HW lane
    # axis, multiply kept in the input dtype (no full-tile f32 copy).
    o_ref[...] = (x * s[:, :, None].astype(x.dtype)).astype(o_ref.dtype)


# ----------------------------------------------------------------------------
# Wrapper
# ----------------------------------------------------------------------------
def squeeze_excitation(x_nchw, w1, b1, w2, b2, *, b_tile=None,
                       vmem_budget_bytes=12 * 1024 * 1024):
    """SqueezeExcitation forward.

    x_nchw : (N, C, H, W)   input feature map (PyTorch layout, kept as-is)
    w1     : (C, S)         == fc1.weight.reshape(S, C).T
    b1     : (S,)           == fc1.bias
    w2     : (S, C)         == fc2.weight.reshape(C, S).T
    b2     : (C,)           == fc2.bias
    returns (N, C, H, W)
    """
    N, C, H, W = x_nchw.shape
    S = w1.shape[1]
    HW = H * W

    # NCHW-native: reshape only — no transpose, no extra HBM pass.
    x = x_nchw.reshape(N, C, HW)
    b1r = b1.reshape(1, S).astype(jnp.float32)
    b2r = b2.reshape(1, C).astype(jnp.float32)

    itemsize = jnp.dtype(x_nchw.dtype).itemsize
    per_image = C * HW * itemsize
    if b_tile is None:
        # in + out blocks, each double-buffered -> 4 block copies in flight.
        b_tile = int(max(1, min(N, vmem_budget_bytes // (4 * per_image))))
    grid_n = pl.cdiv(N, b_tile)

    # Explicit scoped-VMEM limit: block traffic + resident weights/biases +
    # headroom, capped at 32 MiB (<= default scoped limit on v6e/v7x and well
    # under physical VMEM on every generation; covers v5e's 16 MiB default).
    const_bytes = 2 * (w1.size * w1.dtype.itemsize
                       + w2.size * w2.dtype.itemsize + 4 * (S + C))
    vmem_need = 4 * b_tile * per_image + const_bytes + (2 << 20)
    vmem_limit = int(min(max(vmem_need, 16 << 20), 32 << 20))

    out = pl.pallas_call(
        _se_kernel,
        out_shape=jax.ShapeDtypeStruct((N, C, HW), x_nchw.dtype),
        grid_spec=pltpu.PrefetchScalarGridSpec(
            num_scalar_prefetch=0,
            grid=(grid_n,),
            in_specs=[
                pl.BlockSpec((b_tile, C, HW), lambda n: (n, 0, 0)),  # x tile
                pl.BlockSpec((C, S), lambda n: (0, 0)),              # w1 (resident)
                pl.BlockSpec((1, S), lambda n: (0, 0)),              # b1
                pl.BlockSpec((S, C), lambda n: (0, 0)),              # w2 (resident)
                pl.BlockSpec((1, C), lambda n: (0, 0)),              # b2
            ],
            out_specs=pl.BlockSpec((b_tile, C, HW), lambda n: (n, 0, 0)),
        ),
        compiler_params=pltpu.CompilerParams(
            dimension_semantics=("parallel",),
            vmem_limit_bytes=vmem_limit,
        ),
    )(x, w1, b1r, w2, b2r)

    return out.reshape(N, C, H, W)


# ----------------------------------------------------------------------------
# Pure-JAX reference (matches the PyTorch module's math)
# ----------------------------------------------------------------------------
def se_reference(x, w1, b1, w2, b2):
    pooled = jnp.mean(x, axis=(2, 3))                       # (N, C)
    h = jnp.maximum(pooled @ w1 + b1, 0.0)                  # (N, S)
    s = jnp.clip((h @ w2 + b2) / 6.0 + 0.5, 0.0, 1.0)       # Hardsigmoid
    return x * s[:, :, None, None]


# ----------------------------------------------------------------------------
if __name__ == "__main__":
    IN_CHANNELS = 128       # second-to-last (sublane) axis inside the kernel
    SQUEEZE_CHANNELS = 32
    N, H, W = 4, 16, 16     # HW = 256 -> lane-dense tiles and stores

    key = jax.random.PRNGKey(0)
    kx, k1, k2, k3, k4 = jax.random.split(key, 5)
    x = jax.random.normal(kx, (N, IN_CHANNELS, H, W), jnp.float32)

    # Conv2d(C, S, 1) / Conv2d(S, C, 1) expressed as matmul operands.
    w1 = jax.random.normal(k1, (IN_CHANNELS, SQUEEZE_CHANNELS), jnp.float32) \
        / jnp.sqrt(float(IN_CHANNELS))
    b1 = 0.1 * jax.random.normal(k2, (SQUEEZE_CHANNELS,), jnp.float32)
    w2 = jax.random.normal(k3, (SQUEEZE_CHANNELS, IN_CHANNELS), jnp.float32) \
        / jnp.sqrt(float(SQUEEZE_CHANNELS))
    b2 = 0.1 * jax.random.normal(k4, (IN_CHANNELS,), jnp.float32)

    # b_tile=2 -> grid of 2 steps (exercises batching + pipelining).
    fwd = jax.jit(lambda *a: squeeze_excitation(*a, b_tile=2))
    out = jax.block_until_ready(fwd(x, w1, b1, w2, b2))

    ref = se_reference(x, w1, b1, w2, b2)
    assert out.shape == x.shape, out.shape
    assert bool(jnp.isfinite(out).all())
    np.testing.assert_allclose(np.asarray(out), np.asarray(ref),
                               rtol=1e-5, atol=1e-5)
    print("KERNEL_OK")
</pallas_src>

<mosaic_0001>
module attributes {stable_mosaic.version = 11 : i64} {
  func.func @_se_kernel(%arg0: i32, %arg1: memref<2x128x256xf32, #tpu.memory_space<vmem>>, %arg2: memref<128x32xf32, #tpu.memory_space<vmem>>, %arg3: memref<1x32xf32, #tpu.memory_space<vmem>>, %arg4: memref<32x128xf32, #tpu.memory_space<vmem>>, %arg5: memref<1x128xf32, #tpu.memory_space<vmem>>, %arg6: memref<2x128x256xf32, #tpu.memory_space<vmem>>) attributes {dimension_semantics = [#tpu.dimension_semantics<parallel>], iteration_bounds = array<i64: 2>, scalar_prefetch = 0 : i64, scratch_operands = 0 : i64, tpu.core_type = #tpu.core_type<tc>, window_params = [{transform_indices = @transform_0, window_bounds = array<i64: 2, 128, 256>}, {pipeline_mode = #tpu.pipeline_mode<synchronous>, transform_indices = @transform_1, window_bounds = array<i64: 128, 32>}, {pipeline_mode = #tpu.pipeline_mode<synchronous>, transform_indices = @transform_2, window_bounds = array<i64: 1, 32>}, {pipeline_mode = #tpu.pipeline_mode<synchronous>, transform_indices = @transform_3, window_bounds = array<i64: 32, 128>}, {pipeline_mode = #tpu.pipeline_mode<synchronous>, transform_indices = @transform_4, window_bounds = array<i64: 1, 128>}, {transform_indices = @transform_5, window_bounds = array<i64: 2, 128, 256>}]} {
    %c0 = arith.constant 0 : index
    %c0_0 = arith.constant 0 : index
    %c0_1 = arith.constant 0 : index
    %0 = vector.load %arg1[%c0, %c0_0, %c0_1] : memref<2x128x256xf32, #tpu.memory_space<vmem>>, vector<2x128x256xf32>
    %cst = arith.constant dense<0.000000e+00> : vector<2x128xf32>
    %1 = vector.multi_reduction <add>, %0, %cst [2] : vector<2x128x256xf32> to vector<2x128xf32>
    %cst_2 = arith.constant 3.906250e-03 : f32
    %2 = vector.broadcast %cst_2 : f32 to vector<2x128xf32>
    %3 = arith.mulf %1, %2 : vector<2x128xf32>
    %c0_3 = arith.constant 0 : index
    %c0_4 = arith.constant 0 : index
    %4 = vector.load %arg2[%c0_3, %c0_4] : memref<128x32xf32, #tpu.memory_space<vmem>>, vector<128x32xf32>
    %cst_5 = arith.constant dense<0.000000e+00> : vector<2x32xf32>
    %5 = tpu.matmul %3, %4, %cst_5 {dimension_numbers = #tpu.dot_dimension_numbers<[1], [0], [0], [1], [0, 0, 1, 1], [], []>} : vector<2x128xf32>, vector<128x32xf32>, vector<2x32xf32> -> vector<2x32xf32>
    %c0_6 = arith.constant 0 : index
    %c0_7 = arith.constant 0 : index
    %6 = vector.load %arg3[%c0_6, %c0_7] : memref<1x32xf32, #tpu.memory_space<vmem>>, vector<1x32xf32>
    %7 = vector.broadcast %6 : vector<1x32xf32> to vector<2x32xf32>
    %8 = arith.addf %5, %7 : vector<2x32xf32>
    %cst_8 = arith.constant 0.000000e+00 : f32
    %9 = vector.broadcast %cst_8 : f32 to vector<2x32xf32>
    %10 = arith.maximumf %8, %9 : vector<2x32xf32>
    %c0_9 = arith.constant 0 : index
    %c0_10 = arith.constant 0 : index
    %11 = vector.load %arg4[%c0_9, %c0_10] : memref<32x128xf32, #tpu.memory_space<vmem>>, vector<32x128xf32>
    %cst_11 = arith.constant dense<0.000000e+00> : vector<2x128xf32>
    %12 = tpu.matmul %10, %11, %cst_11 {dimension_numbers = #tpu.dot_dimension_numbers<[1], [0], [0], [1], [0, 0, 1, 1], [], []>} : vector<2x32xf32>, vector<32x128xf32>, vector<2x128xf32> -> vector<2x128xf32>
    %c0_12 = arith.constant 0 : index
    %c0_13 = arith.constant 0 : index
    %13 = vector.load %arg5[%c0_12, %c0_13] : memref<1x128xf32, #tpu.memory_space<vmem>>, vector<1x128xf32>
    %14 = vector.broadcast %13 : vector<1x128xf32> to vector<2x128xf32>
    %15 = arith.addf %12, %14 : vector<2x128xf32>
    %cst_14 = arith.constant 0.166666672 : f32
    %16 = vector.broadcast %cst_14 : f32 to vector<2x128xf32>
    %17 = arith.mulf %15, %16 : vector<2x128xf32>
    %cst_15 = arith.constant 5.000000e-01 : f32
    %18 = vector.broadcast %cst_15 : f32 to vector<2x128xf32>
    %19 = arith.addf %17, %18 : vector<2x128xf32>
    %cst_16 = arith.constant 0.000000e+00 : f32
    %cst_17 = arith.constant 1.000000e+00 : f32
    %20 = vector.broadcast %cst_16 : f32 to vector<2x128xf32>
    %21 = arith.maximumf %20, %19 : vector<2x128xf32>
    %22 = vector.broadcast %cst_17 : f32 to vector<2x128xf32>
    %23 = arith.minimumf %22, %21 : vector<2x128xf32>
    %24 = vector.shape_cast %23 : vector<2x128xf32> to vector<2x128x1xf32>
    %25 = vector.broadcast %24 : vector<2x128x1xf32> to vector<2x128x256xf32>
    %26 = arith.mulf %0, %25 : vector<2x128x256xf32>
    %c0_18 = arith.constant 0 : index
    %c0_19 = arith.constant 0 : index
    %c0_20 = arith.constant 0 : index
    %27 = vector.load %arg6[%c0_18, %c0_19, %c0_20] : memref<2x128x256xf32, #tpu.memory_space<vmem>>, vector<2x128x256xf32>
    tpu.vector_store %arg6[%c0_18, %c0_19, %c0_20], %26 {strides = array<i32>} : memref<2x128x256xf32, #tpu.memory_space<vmem>>, vector<2x128x256xf32>,
    return
  }
  func.func @transform_0(%arg0: i32) -> (i32, i32, i32) {
    %c0_i32 = arith.constant 0 : i32
    %c0_i32_0 = arith.constant 0 : i32
    %c0_i32_1 = arith.constant 0 : i32
    return %arg0, %c0_i32, %c0_i32_0 : i32, i32, i32
  }
  func.func @transform_1(%arg0: i32) -> (i32, i32) {
    %c0_i32 = arith.constant 0 : i32
    %c0_i32_0 = arith.constant 0 : i32
    %c0_i32_1 = arith.constant 0 : i32
    return %c0_i32, %c0_i32_0 : i32, i32
  }
  func.func @transform_2(%arg0: i32) -> (i32, i32) {
    %c0_i32 = arith.constant 0 : i32
    %c0_i32_0 = arith.constant 0 : i32
    %c0_i32_1 = arith.constant 0 : i32
    return %c0_i32, %c0_i32_0 : i32, i32
  }
  func.func @transform_3(%arg0: i32) -> (i32, i32) {
    %c0_i32 = arith.constant 0 : i32
    %c0_i32_0 = arith.constant 0 : i32
    %c0_i32_1 = arith.constant 0 : i32
    return %c0_i32, %c0_i32_0 : i32, i32
  }
  func.func @transform_4(%arg0: i32) -> (i32, i32) {
    %c0_i32 = arith.constant 0 : i32
    %c0_i32_0 = arith.constant 0 : i32
    %c0_i32_1 = arith.constant 0 : i32
    return %c0_i32, %c0_i32_0 : i32, i32
  }
  func.func @transform_5(%arg0: i32) -> (i32, i32, i32) {
    %c0_i32 = arith.constant 0 : i32
    %c0_i32_0 = arith.constant 0 : i32
    %c0_i32_1 = arith.constant 0 : i32
    return %arg0, %c0_i32, %c0_i32_0 : i32, i32, i32
  }
}

</mosaic_0001>

<bundles_post_ra>
// kernel: _lambda_.1
= control target key start
LH: loop header
LB: loop body
LE: loop exit
PB: predicated region body
PF: predicated region fallthrough
CT: control target
= control target key end

     0   :  { %s1321_s18 = smov 0   ;;  %s1934_s0 = inlined_call_operand.vmem [shape: f32[4,128,256], index: 0, kind: input, shape index: {}]   ;;  %s1935_s1 = inlined_call_operand.vmem [shape: f32[128,32], index: 1, kind: input, shape index: {}]   ;;  %s1936_s2 = inlined_call_operand.vmem [shape: f32[1,32], index: 2, kind: input, shape index: {}]   ;;  %s1937_s3 = inlined_call_operand.vmem [shape: f32[32,128], index: 3, kind: input, shape index: {}]   ;;  %s1938_s4 = inlined_call_operand.vmem [shape: f32[1,128], index: 4, kind: input, shape index: {}]   ;;  %s1939_s5 = inlined_call_operand.vmem [shape: f32[4,128,256], index: 5, kind: output, shape index: {}]  }
   0x1 LB: > { %s1153_s19 = sadd.s32 4294967295, %s1286_s18   ;;  %p1157_p0 = scmp.ge.s32.totalorder %s1286_s18, 1  ;;  %s1286_s18 = sphi %s1321_s18, %s15_s18  }
   0x2   : > { %p189_p1 = scmp.lt.s32.totalorder %s1286_s18, 3 }
   0x4   : > { %p190_p2 = pnand %p1157_p0, %p189_p1 }
   0x6   : > { %193 = sbr.rel (%p190_p2) target bundleno = 853 (0x355), region = 40 }
   0xd   : > { %s1158_s20 = sshll.u32 %s1153_s19, 1  ;;  %vm1289_vm0 = vmmov 0   ;;  %vm491_vm1 = vcmask 130112   ;;  %vm498_vm2 = vcmask 195712   ;;  %vm505_vm3 = vcmask 261312  }
   0xe   : > { %p220_p3 = scmp.lt.s32.totalorder %s1158_s20, 3  ;;  %vm512_vm4 = vcmask 326912   ;;  %vm519_vm5 = vcmask 392512   ;;  %vm526_vm6 = vcmask 458112   ;;  %vm533_vm7 = vcmask 523712  }
   0xf   : > { %vm540_vm8 = vcmask 589312   ;;  %vm547_vm9 = vcmask 654912   ;;  %vm554_vm10 = vcmask 720512   ;;  %vm561_vm11 = vcmask 786112  }
  0x10   : > { %s2097_s20 = smov (!%p220_p3, %s1158_s20), 3  ;;  %vm568_vm12 = vcmask 851712   ;;  %vm575_vm13 = vcmask 917312   ;;  %vm582_vm14 = vcmask 982912   ;;  %vm589_vm15 = vcmask 1048512  }
  0x11   : > { %s1169_s21 = sshll.u32 %s2097_s20, 8 }
  0x12   : > { %s1337_s24 = scalar_lea.vmem %s1934_s0, %s1169_s21  ;;  %s1801_s27 = scalar_lea.vmem %s1939_s5, %s1169_s21 }
  0x13   : > { %v1340_v0 = vld [vmem:[%s1337_s24 + $0x100] sm:$0xff]  ;;  %v1343_v1 = vld [vmem:[%s1337_s24 + $0x108] sm:$0xff]  ;;  %v1354_v5 = vld [vmem:[%s1337_s24 + $0x110] sm:$0xff] }
  0x14   : > { %1992 = vst [vmem:[#allocation2_spill] sm:$0xff] %v1340_v0  ;;  %1993 = vst [vmem:[#allocation3_spill] sm:$0xff] %v1343_v1  ;;  %v1346_v2 = vld [vmem:[%s1337_s24] sm:$0xff]  ;;  %v345_v3 = vadd.f32 %v1343_v1, %v1340_v0  ;;  %v1351_v4 = vld [vmem:[%s1337_s24 + $0x8] sm:$0xff] }
  0x15   : > { %1994 = vst [vmem:[#allocation4_spill] sm:$0xff] %v1354_v5  ;;  %v1357_v6 = vld [vmem:[%s1337_s24 + $0x118] sm:$0xff]  ;;  %v297_v7 = vadd.f32 %v1351_v4, %v1346_v2  ;;  %v1362_v8 = vld [vmem:[%s1337_s24 + $0x10] sm:$0xff]  ;;  %v1372_v12 = vld [vmem:[%s1337_s24 + $0x120] sm:$0xff] }
  0x16   : > { %1995 = vst [vmem:[#allocation5_spill] sm:$0xff] %v1357_v6  ;;  %v1365_v9 = vld [vmem:[%s1337_s24 + $0x18] sm:$0xff]  ;;  %346 = vadd.xlane.f32.xlu1 %v345_v3  ;;  %v348_v10 = vadd.f32 %v1357_v6, %v1354_v5  ;;  %1996 = vst [vmem:[#allocation6_spill] sm:$0xff] %v1372_v12  ;;  %v1375_v13 = vld [vmem:[%s1337_s24 + $0x128] sm:$0xff] }
  0x17   : > { %298 = vadd.xlane.f32.xlu0 %v297_v7  ;;  %v300_v11 = vadd.f32 %v1365_v9, %v1362_v8  ;;  %1997 = vst [vmem:[#allocation7_spill] sm:$0xff] %v1375_v13  ;;  %v1378_v14 = vld [vmem:[%s1337_s24 + $0x20] sm:$0xff]  ;;  %v1381_v15 = vld [vmem:[%s1337_s24 + $0x28] sm:$0xff]  ;;  %v351_v16 = vadd.f32 %v1375_v13, %v1372_v12  ;;  %v1388_v18 = vld [vmem:[%s1337_s24 + $0x130] sm:$0xff] }
  0x18   : > { %v303_v17 = vadd.f32 %v1381_v15, %v1378_v14  ;;  %1998 = vst [vmem:[#allocation8_spill] sm:$0xff] %v1388_v18  ;;  %v1391_v19 = vld [vmem:[%s1337_s24 + $0x138] sm:$0xff]  ;;  %v1394_v20 = vld [vmem:[%s1337_s24 + $0x30] sm:$0xff]  ;;  %v1404_v24 = vld [vmem:[%s1337_s24 + $0x140] sm:$0xff] }
  0x19   : > { %1999 = vst [vmem:[#allocation9_spill] sm:$0xff] %v1391_v19  ;;  %v1397_v21 = vld [vmem:[%s1337_s24 + $0x38] sm:$0xff]  ;;  %v354_v22 = vadd.f32 %v1391_v19, %v1388_v18  ;;  %2000 = vst [vmem:[#allocation10_spill] sm:$0xff] %v1404_v24  ;;  %v1407_v25 = vld [vmem:[%s1337_s24 + $0x148] sm:$0xff] }
  0x1a   : > { %349 = vadd.xlane.f32.xlu1 %v348_v10  ;;  %v306_v23 = vadd.f32 %v1397_v21, %v1394_v20  ;;  %2001 = vst [vmem:[#allocation11_spill] sm:$0xff] %v1407_v25  ;;  %v1410_v26 = vld [vmem:[%s1337_s24 + $0x40] sm:$0xff]  ;;  %v1413_v27 = vld [vmem:[%s1337_s24 + $0x48] sm:$0xff]  ;;  %v357_v28 = vadd.f32 %v1407_v25, %v1404_v24  ;;  %v1420_v30 = vld [vmem:[%s1337_s24 + $0x150] sm:$0xff] }
  0x1b   : > { %301 = vadd.xlane.f32.xlu0 %v300_v11  ;;  %v309_v29 = vadd.f32 %v1413_v27, %v1410_v26  ;;  %2002 = vst [vmem:[#allocation12_spill] sm:$0xff] %v1420_v30  ;;  %v1423_v31 = vld [vmem:[%s1337_s24 + $0x158] sm:$0xff]  ;;  %v1426_v32 = vld [vmem:[%s1337_s24 + $0x50] sm:$0xff]  ;;  %v1436_v36 = vld [vmem:[%s1337_s24 + $0x160] sm:$0xff] }
  0x1c   : > { %2003 = vst [vmem:[#allocation13_spill] sm:$0xff] %v1423_v31  ;;  %2004 = vst [vmem:[#allocation14_spill] sm:$0xff] %v1426_v32  ;;  %v1429_v33 = vld [vmem:[%s1337_s24 + $0x58] sm:$0xff]  ;;  %v360_v34 = vadd.f32 %v1423_v31, %v1420_v30  ;;  %v1439_v37 = vld [vmem:[%s1337_s24 + $0x168] sm:$0xff] }
  0x1d   : > { %2005 = vst [vmem:[#allocation15_spill] sm:$0xff] %v1429_v33  ;;  %v312_v35 = vadd.f32 %v1429_v33, %v1426_v32  ;;  %2006 = vst [vmem:[#allocation16_spill] sm:$0xff] %v1436_v36  ;;  %v1442_v38 = vld [vmem:[%s1337_s24 + $0x60] sm:$0xff]  ;;  %v1445_v39 = vld [vmem:[%s1337_s24 + $0x68] sm:$0xff]  ;;  %v363_v40 = vadd.f32 %v1439_v37, %v1436_v36 }
  0x1e   : > { %352 = vadd.xlane.f32.xlu1 %v351_v16  ;;  %2007 = vst [vmem:[#allocation17_spill] sm:$0xff] %v1439_v37  ;;  %v315_v41 = vadd.f32 %v1445_v39, %v1442_v38  ;;  %v1452_v42 = vld [vmem:[%s1337_s24 + $0x170] sm:$0xff]  ;;  %v1455_v43 = vld [vmem:[%s1337_s24 + $0x178] sm:$0xff]  ;;  %v1468_v48 = vld [vmem:[%s1337_s24 + $0x180] sm:$0xff] }
  0x1f   : > { %304 = vadd.xlane.f32.xlu0 %v303_v17  ;;  %2008 = vst [vmem:[#allocation18_spill] sm:$0xff] %v1452_v42  ;;  %2009 = vst [vmem:[#allocation19_spill] sm:$0xff] %v1455_v43  ;;  %v1458_v44 = vld [vmem:[%s1337_s24 + $0x70] sm:$0xff]  ;;  %v1461_v45 = vld [vmem:[%s1337_s24 + $0x78] sm:$0xff]  ;;  %v366_v46 = vadd.f32 %v1455_v43, %v1452_v42 }
  0x20   : > { %2010 = vst [vmem:[#allocation20_spill] sm:$0xff] %v1458_v44  ;;  %2011 = vst [vmem:[#allocation21_spill] sm:$0xff] %v1461_v45  ;;  %v318_v47 = vadd.f32 %v1461_v45, %v1458_v44  ;;  %v1471_v49 = vld [vmem:[%s1337_s24 + $0x188] sm:$0xff]  ;;  %v1474_v50 = vld [vmem:[%s1337_s24 + $0x80] sm:$0xff] }
  0x21   : > { %2012 = vst [vmem:[#allocation22_spill] sm:$0xff] %v1468_v48  ;;  %2013 = vst [vmem:[#allocation23_spill] sm:$0xff] %v1471_v49  ;;  %v1477_v51 = vld [vmem:[%s1337_s24 + $0x88] sm:$0xff]  ;;  %v369_v52 = vadd.f32 %v1471_v49, %v1468_v48  ;;  %v1484_v54 = vld [vmem:[%s1337_s24 + $0x190] sm:$0xff] }
  0x22   : > { %355 = vadd.xlane.f32.xlu1 %v354_v22  ;;  %2014 = vst [vmem:[#allocation24_spill] sm:$0xff] %v1474_v50  ;;  %2015 = vst [vmem:[#allocation25_spill] sm:$0xff] %v1477_v51  ;;  %v321_v53 = vadd.f32 %v1477_v51, %v1474_v50  ;;  %v1487_v55 = vld [vmem:[%s1337_s24 + $0x198] sm:$0xff]  ;;  %v1490_v56 = vld [vmem:[%s1337_s24 + $0x90] sm:$0xff] }
  0x23   : > { %307 = vadd.xlane.f32.xlu0 %v306_v23  ;;  %2016 = vst [vmem:[#allocation26_spill] sm:$0xff] %v1484_v54  ;;  %2017 = vst [vmem:[#allocation27_spill] sm:$0xff] %v1487_v55  ;;  %v1493_v57 = vld [vmem:[%s1337_s24 + $0x98] sm:$0xff]  ;;  %v372_v58 = vadd.f32 %v1487_v55, %v1484_v54  ;;  %v1500_v60 = vld [vmem:[%s1337_s24 + $0x1a0] sm:$0xff] }
  0x24   : > { %2018 = vst [vmem:[#allocation28_spill] sm:$0xff] %v1490_v56  ;;  %2019 = vst [vmem:[#allocation29_spill] sm:$0xff] %v1493_v57  ;;  %v324_v59 = vadd.f32 %v1493_v57, %v1490_v56  ;;  %v1503_v61 = vld [vmem:[%s1337_s24 + $0x1a8] sm:$0xff]  ;;  %v1506_v62 = vld [vmem:[%s1337_s24 + $0xa0] sm:$0xff] }
  0x25   : > { %2020 = vst [vmem:[#allocation30_spill] sm:$0xff] %v1500_v60  ;;  %2021 = vst [vmem:[#allocation31_spill] sm:$0xff] %v1503_v61  ;;  %v1509_v63 = vld [vmem:[%s1337_s24 + $0xa8] sm:$0xff]  ;;  %v375_v3 = vadd.f32 %v1503_v61, %v1500_v60  ;;  %v1516_v10 = vld [vmem:[%s1337_s24 + $0x1b0] sm:$0xff] }
  0x26   : > { %358 = vadd.xlane.f32.xlu1 %v357_v28  ;;  %2022 = vst [vmem:[#allocation32_spill] sm:$0xff] %v1506_v62  ;;  %2023 = vst [vmem:[#allocation33_spill] sm:$0xff] %v1509_v63  ;;  %v327_v7 = vadd.f32 %v1509_v63, %v1506_v62  ;;  %v1519_v11 = vld [vmem:[%s1337_s24 + $0x1b8] sm:$0xff]  ;;  %v1522_v16 = vld [vmem:[%s1337_s24 + $0xb0] sm:$0xff] }
  0x27   : > { %310 = vadd.xlane.f32.xlu0 %v309_v29  ;;  %2024 = vst [vmem:[#allocation34_spill] sm:$0xff] %v1516_v10  ;;  %2025 = vst [vmem:[#allocation35_spill] sm:$0xff] %v1519_v11  ;;  %v1525_v17 = vld [vmem:[%s1337_s24 + $0xb8] sm:$0xff]  ;;  %v378_v22 = vadd.f32 %v1519_v11, %v1516_v10  ;;  %v1532_v28 = vld [vmem:[%s1337_s24 + $0x1c0] sm:$0xff]  ;;  %v1288_v10 = vmov 0.0|0.0  }
  0x28   : > { %2026 = vst [vmem:[#allocation36_spill] sm:$0xff] %v1522_v16  ;;  %2027 = vst [vmem:[#allocation37_spill] sm:$0xff] %v1525_v17  ;;  %v330_v23 = vadd.f32 %v1525_v17, %v1522_v16  ;;  %v1535_v29 = vld [vmem:[%s1337_s24 + $0x1c8] sm:$0xff]  ;;  %1239 = vmatprep.subr.bf16.mxu0 %v1288_v10  ;;  %1263 = vmatprep.subr.bf16.mxu1 %v1288_v10  ;;  %v1598_v55 = vld [vmem:[%s1337_s24 + $0xf0] sm:$0xff] }
  0x29   : > { %2028 = vst [vmem:[#allocation38_spill] sm:$0xff] %v1532_v28  ;;  %2029 = vst [vmem:[#allocation39_spill] sm:$0xff] %v1535_v29  ;;  %v1573_v11 = vld [vmem:[%s1337_s24 + $0x1e8] sm:$0xff]  ;;  %v1601_v54 = vld [vmem:[%s1337_s24 + $0xf8] sm:$0xff] }
  0x2a   : > { %361 = vadd.xlane.f32.xlu1 %v360_v34  ;;  %v1538_v34 = vld [vmem:[%s1337_s24 + $0xc0] sm:$0xff]  ;;  %2037 = vst [vmem:[#allocation47_spill] sm:$0xff] %v1573_v11  ;;  %2042 = vst [vmem:[#allocation52_spill] sm:$0xff] %v1598_v55 }
  0x2b   : > { %313 = vadd.xlane.f32.xlu0 %v312_v35  ;;  %2030 = vst [vmem:[#allocation40_spill] sm:$0xff] %v1538_v34  ;;  %v1541_v35 = vld [vmem:[%s1337_s24 + $0xc8] sm:$0xff]  ;;  %2043 = vst [vmem:[#allocation53_spill] sm:$0xff] %v1601_v54 }
  0x2c   : > { %2031 = vst [vmem:[#allocation41_spill] sm:$0xff] %v1541_v35 }
  0x2e   : > { %364 = vadd.xlane.f32.xlu1 %v363_v40  ;;  %v381_v40 = vadd.f32 %v1535_v29, %v1532_v28  ;;  %v1576_v29 = vld [vmem:[%s1337_s24 + $0xe0] sm:$0xff]  ;;  %v1595_v28 = vld [vmem:[%s1337_s24 + $0x1f8] sm:$0xff] }
  0x2f   : > { %316 = vadd.xlane.f32.xlu0 %v315_v41  ;;  %v333_v41 = vadd.f32 %v1541_v35, %v1538_v34  ;;  %2038 = vst [vmem:[#allocation48_spill] sm:$0xff] %v1576_v29  ;;  %2041 = vst [vmem:[#allocation51_spill] sm:$0xff] %v1595_v28 }
  0x32   : > { %367 = vadd.xlane.f32.xlu1 %v366_v46  ;;  %v1548_v46 = vld [vmem:[%s1337_s24 + $0x1d0] sm:$0xff] }
  0x33   : > { %319 = vadd.xlane.f32.xlu0 %v318_v47  ;;  %2032 = vst [vmem:[#allocation42_spill] sm:$0xff] %v1548_v46  ;;  %v1551_v47 = vld [vmem:[%s1337_s24 + $0x1d8] sm:$0xff] }
  0x34   : > { %2033 = vst [vmem:[#allocation43_spill] sm:$0xff] %v1551_v47 }
  0x36   : > { %370 = vadd.xlane.f32.xlu1 %v369_v52  ;;  %v1554_v52 = vld [vmem:[%s1337_s24 + $0xd0] sm:$0xff] }
  0x37   : > { %322 = vadd.xlane.f32.xlu0 %v321_v53  ;;  %2034 = vst [vmem:[#allocation44_spill] sm:$0xff] %v1554_v52  ;;  %v1557_v53 = vld [vmem:[%s1337_s24 + $0xd8] sm:$0xff] }
  0x38   : > { %2035 = vst [vmem:[#allocation45_spill] sm:$0xff] %v1557_v53 }
  0x3a   : > { %373 = vadd.xlane.f32.xlu1 %v372_v58  ;;  %v425_v58 = vld [vmem:[%s1935_s1] sm:$0xff] }
  0x3b   : > { %325 = vadd.xlane.f32.xlu0 %v324_v59  ;;  %v426_v59 = vld [vmem:[%s1935_s1 + $0x8] sm:$0xff] }
  0x3e   : > { %376 = vadd.xlane.f32.xlu1 %v375_v3  ;;  %v384_v3 = vadd.f32 %v1551_v47, %v1548_v46 }
  0x3f   : > { %328 = vadd.xlane.f32.xlu0 %v327_v7  ;;  %v1240_v7 = vpack.c.bf16 %v426_v59, %v425_v58  ;;  %v428_v58 = vld [vmem:[%s1935_s1 + $0x18] sm:$0xff] }
  0x41   : > { %1241 = vmatpush3.bf16.msra.mxu0 %v1240_v7  ;;  %v1592_v7 = vld [vmem:[%s1337_s24 + $0x1f0] sm:$0xff] }
  0x42   : > { %379 = vadd.xlane.f32.xlu1 %v378_v22  ;;  %v336_v22 = vadd.f32 %v1557_v53, %v1554_v52  ;;  %1242 = vmatprep.subr.bf16.mxu0 %v1288_v10  ;;  %2040 = vst [vmem:[#allocation50_spill] sm:$0xff] %v1592_v7 }
  0x43   : > { %331 = vadd.xlane.f32.xlu0 %v330_v23  ;;  %v1570_v23 = vld [vmem:[%s1337_s24 + $0x1e0] sm:$0xff] }
  0x44   : > { %2036 = vst [vmem:[#allocation46_spill] sm:$0xff] %v1570_v23  ;;  %v387_v59 = vadd.f32 %v1573_v11, %v1570_v23  ;;  %v342_v11 = vadd.f32 %v1601_v54, %v1598_v55  ;;  %v432_v23 = vld [vmem:[%s1935_s1 + $0x38] sm:$0xff] }
  0x46   : > { %382 = vadd.xlane.f32.xlu1 %v381_v40  ;;  %v1579_v40 = vld [vmem:[%s1337_s24 + $0xe8] sm:$0xff] }
  0x47   : > { %334 = vadd.xlane.f32.xlu0 %v333_v41  ;;  %2039 = vst [vmem:[#allocation49_spill] sm:$0xff] %v1579_v40  ;;  %v427_v41 = vld [vmem:[%s1935_s1 + $0x10] sm:$0xff]  ;;  %v339_v46 = vadd.f32 %v1579_v40, %v1576_v29 }
  0x48   : > { %v1243_v47 = vpack.c.bf16 %v428_v58, %v427_v41  ;;  %v390_v41 = vadd.f32 %v1595_v28, %v1592_v7 }
  0x4a   : > { %385 = vadd.xlane.f32.xlu1 %v384_v3  ;;  %1244 = vmatpush3.bf16.msra.mxu0 %v1243_v47  ;;  %v429_v3 = vld [vmem:[%s1935_s1 + $0x20] sm:$0xff]  ;;  %v431_v47 = vld [vmem:[%s1935_s1 + $0x30] sm:$0xff] }
  0x4b   : > { %337 = vadd.xlane.f32.xlu0 %v336_v22  ;;  %1245 = vmatprep.subr.bf16.mxu0 %v1288_v10  ;;  %v430_v22 = vld [vmem:[%s1935_s1 + $0x28] sm:$0xff] }
  0x4c   : > { %v1246_v58 = vpack.c.bf16 %v430_v22, %v429_v3  ;;  %v434_v3 = vld [vmem:[%s1935_s1 + $0x48] sm:$0xff] }
  0x4e   : > { %388 = vadd.xlane.f32.xlu1 %v387_v59  ;;  %1247 = vmatpush3.bf16.msra.mxu0 %v1246_v58  ;;  %v1249_v59 = vpack.c.bf16 %v432_v23, %v431_v47  ;;  %v435_v58 = vld [vmem:[%s1935_s1 + $0x50] sm:$0xff]  ;;  %v438_v47 = vld [vmem:[%s1935_s1 + $0x68] sm:$0xff] }
  0x4f   : > { %340 = vadd.xlane.f32.xlu0 %v339_v46  ;;  %1248 = vmatprep.subr.bf16.mxu0 %v1288_v10  ;;  %v433_v46 = vld [vmem:[%s1935_s1 + $0x40] sm:$0xff] }
  0x50   : > { %v1252_v22 = vpack.c.bf16 %v434_v3, %v433_v46  ;;  %v439_v46 = vld [vmem:[%s1935_s1 + $0x70] sm:$0xff]  ;;  %v440_v3 = vld [vmem:[%s1935_s1 + $0x78] sm:$0xff] }
  0x52   : > { %391 = vadd.xlane.f32.xlu1 %v390_v41  ;;  %1250 = vmatpush3.bf16.msra.mxu0 %v1249_v59  ;;  %v437_v41 = vld [vmem:[%s1935_s1 + $0x60] sm:$0xff] }
  0x53   : > { %343 = vadd.xlane.f32.xlu0 %v342_v11  ;;  %1251 = vmatprep.subr.bf16.mxu0 %v1288_v10  ;;  %v436_v11 = vld [vmem:[%s1935_s1 + $0x58] sm:$0xff]  ;;  %v1258_v59 = vpack.c.bf16 %v438_v47, %v437_v41 }
  0x54   : > { %v1255_v23 = vpack.c.bf16 %v436_v11, %v435_v58  ;;  %v1290_v58 = vmov 0.0   ;;  %v744_v11 = vld [vmem:[%s1937_s3] sm:$0xff] }
  0x55   : > { %1225 = vmatprep.mubr.msk.f32.mxu0 %vm1289_vm0, %v1290_v58  ;;  %1236 = vmatprep.mubr.msk.f32.mxu1 %vm1289_vm0, %v1290_v58  ;;  %vm670_vm0 = vcmask 1041409  }
  0x56   : > { %1253 = vmatpush3.bf16.msra.mxu0 %v1252_v22  ;;  %v1261_v22 = vpack.c.bf16 %v440_v3, %v439_v46 }
  0x57   : > { %1254 = vmatprep.subr.bf16.mxu0 %v1288_v10 }
  0x5a   : > { %1256 = vmatpush3.bf16.msra.mxu0 %v1255_v23  ;;  %v745_v23 = vld [vmem:[%s1937_s3 + $0x8] sm:$0xff] }
  0x5b   : > { %1257 = vmatprep.subr.bf16.mxu0 %v1288_v10  ;;  %v1264_v41 = vpack.c.bf16 %v745_v23, %v744_v11  ;;  %v480_v11 = vlaneseq }
  0x5d   : > { %1265 = vmatpush3.bf16.msra.mxu1 %v1264_v41  ;;  %v481_v41 = vand.u32 127, %v480_v11  ;;  %v1659_v31 = vshrl.u32 %v480_v11, 7 }
  0x5e   : > { %1259 = vmatpush3.bf16.msra.mxu0 %v1258_v59  ;;  %1266 = vmatprep.subr.bf16.mxu1 %v1288_v10 }
  0x5f   : > { %1260 = vmatprep.subr.bf16.mxu0 %v1288_v10  ;;  %v486_v30 = vadd.s32 4294967288, %v481_v41  ;;  %v493_v37 = vadd.s32 4294967280, %v481_v41  ;;  %v500_v19 = vadd.s32 4294967272, %v481_v41  ;;  %v507_v18 = vadd.s32 4294967264, %v481_v41 }
  0x60   : > { %v514_v24 = vadd.s32 4294967256, %v481_v41  ;;  %v521_v6 = vadd.s32 4294967248, %v481_v41  ;;  %v528_v5 = vadd.s32 4294967240, %v481_v41  ;;  %v1666_v13 = vsub.s32 %v481_v41, %v1659_v31 }
  0x61   : > { %v535_v12 = vadd.s32 4294967232, %v481_v41  ;;  %v542_v54 = vadd.s32 4294967224, %v481_v41  ;;  %v549_v55 = vadd.s32 4294967216, %v481_v41  ;;  %v489_v11 = vsub.s32 %v486_v30, %v1659_v31 }
  0x62   : > { %1262 = vmatpush3.bf16.msra.mxu0 %v1261_v22  ;;  %v1670_v1 = vsub.s32 %v493_v37, %v1659_v31  ;;  %v556_v53 = vadd.s32 4294967208, %v481_v41  ;;  %v1675_v52 = vsub.s32 %v500_v19, %v1659_v31  ;;  %v1678_v40 = vsub.s32 %v507_v18, %v1659_v31 }
  0x63   : > { %v563_v17 = vadd.s32 4294967200, %v481_v41  ;;  %v1683_v30 = vsub.s32 %v514_v24, %v1659_v31  ;;  %v1686_v37 = vsub.s32 %v521_v6, %v1659_v31  ;;  %v1689_v16 = vsub.s32 %v528_v5, %v1659_v31 }
  0x64   : > { %v570_v35 = vadd.s32 4294967192, %v481_v41  ;;  %v1692_v19 = vsub.s32 %v535_v12, %v1659_v31  ;;  %v1695_v18 = vsub.s32 %v542_v54, %v1659_v31  ;;  %v1698_v57 = vsub.s32 %v549_v55, %v1659_v31 }
  0x65   : > { %v1701_v63 = vsub.s32 %v556_v53, %v1659_v31  ;;  %v577_v5 = vadd.s32 4294967184, %v481_v41  ;;  %v1704_v12 = vsub.s32 %v563_v17, %v1659_v31  ;;  %v584_v53 = vadd.s32 4294967176, %v481_v41 }
  0x66   : > { %v1707_v55 = vsub.s32 %v570_v35, %v1659_v31 }
  0x67   : > { %v1712_v17 = vsub.s32 %v577_v5, %v1659_v31 }
  0xa3   : > { %v347_v47 = vpop.xlane.xlu1 %346 }
  0xa4   : > { %v299_v59 = vpop.xlane.xlu0 %298  ;;  %v409_v62 = vmul.f32 0.00390625, %v347_v47 }
  0xa5   : > { %v393_v54 = vmul.f32 0.00390625, %v299_v59 }
  0xa7   : > { %v350_v28 = vpop.xlane.xlu1 %349 }
  0xa8   : > { %v302_v46 = vpop.xlane.xlu0 %301  ;;  %v410_v34 = vmul.f32 0.00390625, %v350_v28 }
  0xa9   : > { %v394_v24 = vmul.f32 0.00390625, %v302_v46 }
  0xaa   : > { %v598_v46 = vrot.slane %v410_v34, %v489_v11 }
  0xab   : > { %v353_v3 = vpop.xlane.xlu1 %352  ;;  %v490_v32 = vrot.slane %v394_v24, %v489_v11 }
  0xac   : > { %v305_v22 = vpop.xlane.xlu0 %304  ;;  %v411_v56 = vmul.f32 0.00390625, %v353_v3 }
  0xad   : > { %v395_v28 = vmul.f32 0.00390625, %v305_v22 }
  0xae   : > { %v603_v47 = vrot.slane %v411_v56, %v1670_v1 }
  0xaf   : > { %v356_v7 = vpop.xlane.xlu1 %355  ;;  %v497_v59 = vrot.slane %v395_v28, %v1670_v1 }
  0xb0   : > { %v308_v61 = vpop.xlane.xlu0 %307  ;;  %v412_v45 = vmul.f32 0.00390625, %v356_v7 }
  0xb1   : > { %v396_v51 = vmul.f32 0.00390625, %v308_v61  ;;  %v594_v61 = vrot.slane %v409_v62, %v1666_v13 }
  0xb2   : > { %v608_v35 = vrot.slane %v412_v45, %v1675_v52  ;;  %v1726_v45 = vsub.s32 %v584_v53, %v1659_v31 }
  0xb3   : > { %v359_v58 = vpop.xlane.xlu1 %358  ;;  %v504_v56 = vrot.slane %v396_v51, %v1675_v52  ;;  %v599_v41 = vsel %vm491_vm1, %v598_v46, %v594_v61 }
  0xb4   : > { %v311_v60 = vpop.xlane.xlu0 %310  ;;  %v413_v50 = vmul.f32 0.00390625, %v359_v58 }
  0xb5   : > { %v397_v3 = vmul.f32 0.00390625, %v311_v60  ;;  %v485_v60 = vrot.slane %v393_v54, %v1666_v13  ;;  %v604_v13 = vsel %vm498_vm2, %v603_v47, %v599_v41 }
  0xb7   : > { %v362_v43 = vpop.xlane.xlu1 %361  ;;  %v511_v62 = vrot.slane %v397_v3, %v1678_v40 }
  0xb8   : > { %v1649_v42 = vpop.xlane.xlu0 %313  ;;  %v414_v33 = vmul.f32 0.00390625, %v362_v43 }
  0xb9   : > { %v398_v7 = vmul.f32 0.00390625, %v1649_v42  ;;  %v613_v42 = vrot.slane %v413_v50, %v1678_v40  ;;  %v609_v40 = vsel %vm505_vm3, %v608_v35, %v604_v13 }
  0xba   : > { %v618_v1 = vrot.slane %v414_v33, %v1683_v30 }
  0xbb   : > { %v1651_v49 = vpop.xlane.xlu1 %364  ;;  %v518_v51 = vrot.slane %v398_v7, %v1683_v30  ;;  %v614_v5 = vsel %vm512_vm4, %v613_v42, %v609_v40 }
  0xbc   : > { %v1653_v48 = vpop.xlane.xlu0 %316  ;;  %v415_v34 = vmul.f32 0.00390625, %v1651_v49  ;;  %v492_v49 = vsel %vm491_vm1, %v490_v32, %v485_v60  ;;  %v619_v54 = vsel %vm519_vm5, %v618_v1, %v614_v5  ;;  %vm755_vm1 = vcmask 261120  }
  0xbd   : > { %v399_v58 = vmul.f32 0.00390625, %v1653_v48  ;;  %v499_v52 = vsel %vm498_vm2, %v497_v59, %v492_v49 }
  0xbe   : > { %v623_v33 = vrot.slane %v415_v34, %v1686_v37  ;;  %v506_v32 = vsel %vm505_vm3, %v504_v56, %v499_v52 }
  0xbf   : > { %v1655_v23 = vpop.xlane.xlu1 %367  ;;  %v525_v30 = vrot.slane %v399_v58, %v1686_v37  ;;  %v513_v28 = vsel %vm512_vm4, %v511_v62, %v506_v32 }
  0xc0   : > { %v1657_v10 = vpop.xlane.xlu0 %319  ;;  %v416_v50 = vmul.f32 0.00390625, %v1655_v23 }
  0xc1   : > { %v400_v11 = vmul.f32 0.00390625, %v1657_v10  ;;  %v520_v10 = vsel %vm519_vm5, %v518_v51, %v513_v28 }
  0xc2   : > { %v628_v53 = vrot.slane %v416_v50, %v1689_v16 }
  0xc3   : > { %v1661_v36 = vpop.xlane.xlu1 %370  ;;  %v532_v61 = vrot.slane %v400_v11, %v1689_v16 }
  0xc4   : > { %v1663_v25 = vpop.xlane.xlu0 %322  ;;  %v417_v23 = vmul.f32 0.00390625, %v1661_v36  ;;  %v624_v36 = vsel %vm526_vm6, %v623_v33, %v619_v54 }
  0xc5   : > { %v401_v46 = vmul.f32 0.00390625, %v1663_v25  ;;  %v629_v41 = vsel %vm533_vm7, %v628_v53, %v624_v36 }
  0xc6   : > { %v633_v25 = vrot.slane %v417_v23, %v1692_v19 }
  0xc7   : > { %v1672_v0 = vpop.xlane.xlu1 %373  ;;  %v539_v42 = vrot.slane %v401_v46, %v1692_v19 }
  0xc8   : > { %v1680_v29 = vpop.xlane.xlu0 %325  ;;  %v418_v3 = vmul.f32 0.00390625, %v1672_v0  ;;  %v527_v0 = vsel %vm526_vm6, %v525_v30, %v520_v10  ;;  %v634_v51 = vsel %vm540_vm8, %v633_v25, %v629_v41 }
  0xc9   : > { %v402_v47 = vmul.f32 0.00390625, %v1680_v29  ;;  %v534_v1 = vsel %vm533_vm7, %v532_v61, %v527_v0  ;;  %v747_v0 = vld [vmem:[%s1937_s3 + $0x18] sm:$0xff] }
  0xca   : > { %v638_v29 = vrot.slane %v418_v3, %v1695_v18 }
  0xcb   : > { %v377_v6 = vpop.xlane.xlu1 %376  ;;  %v546_v16 = vrot.slane %v402_v47, %v1695_v18  ;;  %v541_v18 = vsel %vm540_vm8, %v539_v42, %v534_v1  ;;  %v835_v1 = vsub.s32 0, %v1659_v31 }
  0xcc   : > { %v329_v44 = vpop.xlane.xlu0 %328  ;;  %v419_v7 = vmul.f32 0.00390625, %v377_v6  ;;  %v639_v40 = vsel %vm547_vm9, %v638_v29, %v634_v51 }
  0xcd   : > { %v403_v59 = vmul.f32 0.00390625, %v329_v44 }
  0xce   : > { %v643_v44 = vrot.slane %v419_v7, %v1698_v57 }
  0xcf   : > { %v380_v22 = vpop.xlane.xlu1 %379  ;;  %v553_v49 = vrot.slane %v403_v59, %v1698_v57  ;;  %v548_v57 = vsel %vm547_vm9, %v546_v16, %v541_v18 }
  0xd0   : > { %v332_v43 = vpop.xlane.xlu0 %331  ;;  %v420_v35 = vmul.f32 0.00390625, %v380_v22 }
  0xd1   : > { %v404_v60 = vmul.f32 0.00390625, %v332_v43  ;;  %v555_v30 = vsel %vm554_vm10, %v553_v49, %v548_v57 }
  0xd2   : > { %v648_v43 = vrot.slane %v420_v35, %v1701_v63 }
  0xd3   : > { %v383_v48 = vpop.xlane.xlu1 %382  ;;  %v560_v50 = vrot.slane %v404_v60, %v1701_v63 }
  0xd4   : > { %v335_v24 = vpop.xlane.xlu0 %334  ;;  %v421_v56 = vmul.f32 0.00390625, %v383_v48 }
  0xd5   : > { %v405_v6 = vmul.f32 0.00390625, %v335_v24  ;;  %v644_v24 = vsel %vm554_vm10, %v643_v44, %v639_v40 }
  0xd6   : > { %v653_v48 = vrot.slane %v421_v56, %v1704_v12  ;;  %v649_v23 = vsel %vm561_vm11, %v648_v43, %v644_v24 }
  0xd7   : > { %v386_v37 = vpop.xlane.xlu1 %385  ;;  %v567_v33 = vrot.slane %v405_v6, %v1704_v12  ;;  %v562_v12 = vsel %vm561_vm11, %v560_v50, %v555_v30  ;;  %v1165_v6 = vld [vmem:[%s1938_s4] ss:$0 sm:$0xff]  ;;  %v2045_v30 = vld [vmem:[#allocation15_spill] sm:$0xff] }
  0xd8   : > { %v338_v34 = vpop.xlane.xlu0 %337  ;;  %v422_v58 = vmul.f32 0.00390625, %v386_v37  ;;  %v654_v3 = vsel %vm568_vm12, %v653_v48, %v649_v23  ;;  %v2046_v23 = vld [vmem:[#allocation24_spill] sm:$0xff] }
  0xd9   : > { %v406_v22 = vmul.f32 0.00390625, %v338_v34  ;;  %v569_v53 = vsel %vm568_vm12, %v567_v33, %v562_v12  ;;  %v746_v34 = vld [vmem:[%s1937_s3 + $0x10] sm:$0xff] }
  0xda   : > { %v658_v11 = vrot.slane %v422_v58, %v1707_v55  ;;  %v1267_v25 = vpack.c.bf16 %v747_v0, %v746_v34  ;;  %v2054_v34 = vld [vmem:[#allocation40_spill] sm:$0xff] }
  0xdb   : > { %v389_v62 = vpop.xlane.xlu1 %388  ;;  %v574_v32 = vrot.slane %v406_v22, %v1707_v55 }
  0xdc   : > { %v423_v13 = vmul.f32 0.00390625, %v389_v62  ;;  %v341_v19 = vpop.xlane.xlu0 %340  ;;  %v659_v55 = vsel %vm575_vm13, %v658_v11, %v654_v3  ;;  %1268 = vmatpush3.bf16.msra.mxu1 %v1267_v25  ;;  %v2049_v3 = vld [vmem:[#allocation21_spill] sm:$0xff] }
  0xdd   : > { %v407_v52 = vmul.f32 0.00390625, %v341_v19  ;;  %v576_v7 = vsel %vm575_vm13, %v574_v32, %v569_v53  ;;  %v2050_v53 = vld [vmem:[#allocation32_spill] sm:$0xff]  ;;  %v2055_v25 = vld [vmem:[#allocation41_spill] sm:$0xff] }
  0xde   : > { %v663_v5 = vrot.slane %v423_v13, %v1712_v17  ;;  %v902_v13 = vsub.s32 1, %v1659_v31 }
  0xdf   : > { %v392_v63 = vpop.xlane.xlu1 %391  ;;  %v581_v28 = vrot.slane %v407_v52, %v1712_v17 }
  0xe0   : > { %v424_v54 = vmul.f32 0.00390625, %v392_v63  ;;  %v344_v46 = vpop.xlane.xlu0 %343  ;;  %v664_v17 = vsel %vm582_vm14, %v663_v5, %v659_v55  ;;  %v2044_v5 = vld [vmem:[#allocation14_spill] sm:$0xff] }
  0xe1   : > { %v408_v10 = vmul.f32 0.00390625, %v344_v46  ;;  %v583_v36 = vsel %vm582_vm14, %v581_v28, %v576_v7  ;;  %v2047_v28 = vld [vmem:[#allocation25_spill] sm:$0xff]  ;;  %v2048_v46 = vld [vmem:[#allocation20_spill] sm:$0xff] }
  0xe2   : > { %v668_v47 = vrot.slane %v424_v54, %v1726_v45 }
  0xe3   : > { %v588_v37 = vrot.slane %v408_v10, %v1726_v45  ;;  %v1164_v45 = vld [vmem:[%s1936_s2] ss:$0 sm:$0xff] }
  0xe4   : > { %v669_v61 = vsel %vm589_vm15, %v668_v47, %v664_v17  ;;  %v2051_v47 = vld [vmem:[#allocation33_spill] sm:$0xff] }
  0xe5   : > { %v590_v59 = vsel %vm589_vm15, %v588_v37, %v583_v36  ;;  %v2052_v36 = vld [vmem:[#allocation28_spill] sm:$0xff] }
  0xe6   : > { %v671_v35 = vsel %vm670_vm0, %v669_v61, %v590_v59  ;;  %v2053_v59 = vld [vmem:[#allocation29_spill] sm:$0xff] }
  0xe7   : > { %1226 = vmatmul.mubr.f32.vlgmr.msra.gmra.mrb[0].mxu0 %v671_v35 }
 0x1ba   : > { %v739_v60 = vpop.f32.mrb[0].mxu0 }
 0x1bb   : > { %v740_v56 = vadd.f32 %v1164_v45, %v739_v60  ;;  %v1227_v42 = vpop.f32.mrb[1].mxu0 }
 0x1bc   : > { %v2056_v42 = vld [vmem:[#allocation36_spill] sm:$0xff] }
 0x1bd   : > { %v743_v29 = vmax.f32 %v740_v56, 0.0 }
 0x1bf   : > { %1237 = vmatmul.mubr.msk.f32.vlgmr.msra.gmra.mrb[0].mxu1 %vm755_vm1, %v743_v29 }
 0x292   : > { %v825_v58 = vpop.f32.mrb[0].mxu1 }
 0x293   : > { %v826_v41 = vadd.f32 %v1165_v6, %v825_v58  ;;  %v1238_v16 = vpop.f32.mrb[1].mxu1  ;;  %v2057_v6 = vld [vmem:[#allocation37_spill] sm:$0xff] }
 0x295   : > { %v829_v44 = vmul.f32 0.16666667, %v826_v41  ;;  %v2058_v41 = vld [vmem:[#allocation48_spill] sm:$0xff] }
 0x297   : > { %v830_v22 = vadd.f32 0.5, %v829_v44  ;;  %v2059_v44 = vld [vmem:[#allocation49_spill] sm:$0xff] }
 0x299   : > { %v831_v62 = vmax.f32 %v830_v22, 0.0 }
 0x29b   : > { %v832_v49 = vmin.f32 %v831_v62, 1.0 }
 0x29d   : > { %v836_v43 = vrot.slane %v832_v49, %v835_v1  ;;  %v903_v19 = vrot.slane %v832_v49, %v902_v13  ;;  %v2060_v49 = vld [vmem:[#allocation44_spill] sm:$0xff]  ;;  %v2061_v13 = vld [vmem:[#allocation45_spill] sm:$0xff] }
 0x29f   : > { %842 = vbcast.lane.b32.xlu1 %v836_v43, 264  ;;  %838 = vbcast.lane.b32.xlu0 %v836_v43, 256 }
 0x2a3   : > { %846 = vbcast.lane.b32.xlu1 %v836_v43, 272  ;;  %854 = vbcast.lane.b32.xlu0 %v836_v43, 288 }
 0x2a7   : > { %850 = vbcast.lane.b32.xlu1 %v836_v43, 280  ;;  %862 = vbcast.lane.b32.xlu0 %v836_v43, 304 }
 0x2ab   : > { %858 = vbcast.lane.b32.xlu1 %v836_v43, 296  ;;  %870 = vbcast.lane.b32.xlu0 %v836_v43, 320 }
 0x2af   : > { %866 = vbcast.lane.b32.xlu1 %v836_v43, 312  ;;  %878 = vbcast.lane.b32.xlu0 %v836_v43, 336 }
 0x2b3   : > { %874 = vbcast.lane.b32.xlu1 %v836_v43, 328  ;;  %886 = vbcast.lane.b32.xlu0 %v836_v43, 352 }
 0x2b7   : > { %882 = vbcast.lane.b32.xlu1 %v836_v43, 344  ;;  %894 = vbcast.lane.b32.xlu0 %v836_v43, 368 }
 0x2bb   : > { %890 = vbcast.lane.b32.xlu1 %v836_v43, 360  ;;  %905 = vbcast.lane.b32.xlu0 %v903_v19, 256 }
 0x2bf   : > { %898 = vbcast.lane.b32.xlu1 %v836_v43, 376  ;;  %913 = vbcast.lane.b32.xlu0 %v903_v19, 272 }
 0x2c3   : > { %909 = vbcast.lane.b32.xlu1 %v903_v19, 264  ;;  %921 = vbcast.lane.b32.xlu0 %v903_v19, 288 }
 0x2c7   : > { %917 = vbcast.lane.b32.xlu1 %v903_v19, 280  ;;  %929 = vbcast.lane.b32.xlu0 %v903_v19, 304 }
 0x2cb   : > { %925 = vbcast.lane.b32.xlu1 %v903_v19, 296  ;;  %937 = vbcast.lane.b32.xlu0 %v903_v19, 320 }
 0x2cf   : > { %933 = vbcast.lane.b32.xlu1 %v903_v19, 312  ;;  %945 = vbcast.lane.b32.xlu0 %v903_v19, 336 }
 0x2d3   : > { %941 = vbcast.lane.b32.xlu1 %v903_v19, 328  ;;  %953 = vbcast.lane.b32.xlu0 %v903_v19, 352 }
 0x2d7   : > { %949 = vbcast.lane.b32.xlu1 %v903_v19, 344  ;;  %961 = vbcast.lane.b32.xlu0 %v903_v19, 368 }
 0x2db   : > { %957 = vbcast.lane.b32.xlu1 %v903_v19, 360 }
 0x2df   : > { %965 = vbcast.lane.b32.xlu1 %v903_v19, 376 }
 0x311   : > { %v843_v31 = vpop.permute.xlu1 %842  ;;  %v839_v51 = vpop.permute.xlu0 %838 }
 0x312   : > { %v969_v50 = vmul.f32 %v843_v31, %v1362_v8  ;;  %v970_v48 = vmul.f32 %v843_v31, %v1365_v9  ;;  %v967_v52 = vmul.f32 %v839_v51, %v1346_v2  ;;  %v968_v18 = vmul.f32 %v839_v51, %v1351_v4  ;;  %v2062_v31 = vld [vmem:[#allocation2_spill] sm:$0xff] }
 0x314   : > { %1033 = vst [vmem:[%s1801_s27 + $0x10] sm:$0xff] %v969_v50  ;;  %1034 = vst [vmem:[%s1801_s27 + $0x18] sm:$0xff] %v970_v48  ;;  %v2063_v50 = vld [vmem:[#allocation3_spill] sm:$0xff] }
 0x315   : > { %1031 = vst [vmem:[%s1801_s27] sm:$0xff] %v967_v52  ;;  %1032 = vst [vmem:[%s1801_s27 + $0x8] sm:$0xff] %v968_v18  ;;  %v847_v40 = vpop.permute.xlu1 %846  ;;  %v855_v33 = vpop.permute.xlu0 %854 }
 0x316   : > { %v971_v11 = vmul.f32 %v847_v40, %v1378_v14  ;;  %v972_v8 = vmul.f32 %v847_v40, %v1381_v15  ;;  %v975_v9 = vmul.f32 %v855_v33, %v1410_v26  ;;  %v976_v2 = vmul.f32 %v855_v33, %v1413_v27  ;;  %v2064_v40 = vld [vmem:[#allocation52_spill] sm:$0xff] }
 0x318   : > { %1035 = vst [vmem:[%s1801_s27 + $0x20] sm:$0xff] %v971_v11  ;;  %1036 = vst [vmem:[%s1801_s27 + $0x28] sm:$0xff] %v972_v8  ;;  %v2065_v11 = vld [vmem:[#allocation53_spill] sm:$0xff] }
 0x319   : > { %1039 = vst [vmem:[%s1801_s27 + $0x40] sm:$0xff] %v975_v9  ;;  %1040 = vst [vmem:[%s1801_s27 + $0x48] sm:$0xff] %v976_v2  ;;  %v851_v4 = vpop.permute.xlu1 %850  ;;  %v863_v57 = vpop.permute.xlu0 %862  ;;  %v2066_v9 = vld [vmem:[#allocation6_spill] sm:$0xff] }
 0x31a   : > { %v973_v24 = vmul.f32 %v851_v4, %v1394_v20  ;;  %v974_v14 = vmul.f32 %v851_v4, %v1397_v21  ;;  %v979_v15 = vmul.f32 %v863_v57, %v1442_v38  ;;  %v980_v26 = vmul.f32 %v863_v57, %v1445_v39  ;;  %v2067_v4 = vld [vmem:[#allocation7_spill] sm:$0xff] }
 0x31c   : > { %1037 = vst [vmem:[%s1801_s27 + $0x30] sm:$0xff] %v973_v24  ;;  %1038 = vst [vmem:[%s1801_s27 + $0x38] sm:$0xff] %v974_v14 }
 0x31d   : > { %1043 = vst [vmem:[%s1801_s27 + $0x60] sm:$0xff] %v979_v15  ;;  %1044 = vst [vmem:[%s1801_s27 + $0x68] sm:$0xff] %v980_v26  ;;  %v859_v27 = vpop.permute.xlu1 %858  ;;  %v871_v32 = vpop.permute.xlu0 %870  ;;  %v2068_v15 = vld [vmem:[#allocation4_spill] sm:$0xff] }
 0x31e   : > { %v977_v63 = vmul.f32 %v859_v27, %v2044_v5  ;;  %v978_v20 = vmul.f32 %v859_v27, %v2045_v30  ;;  %v983_v21 = vmul.f32 %v871_v32, %v2046_v23  ;;  %v984_v38 = vmul.f32 %v871_v32, %v2047_v28  ;;  %v2069_v27 = vld [vmem:[#allocation5_spill] sm:$0xff]  ;;  %v2070_v5 = vld [vmem:[#allocation10_spill] sm:$0xff]  ;;  %v2071_v30 = vld [vmem:[#allocation11_spill] sm:$0xff] }
 0x31f   : > { %v2072_v28 = vld [vmem:[#allocation8_spill] sm:$0xff] }
 0x320   : > { %1041 = vst [vmem:[%s1801_s27 + $0x50] sm:$0xff] %v977_v63  ;;  %1042 = vst [vmem:[%s1801_s27 + $0x58] sm:$0xff] %v978_v20 }
 0x321   : > { %1047 = vst [vmem:[%s1801_s27 + $0x80] sm:$0xff] %v983_v21  ;;  %1048 = vst [vmem:[%s1801_s27 + $0x88] sm:$0xff] %v984_v38  ;;  %v867_v39 = vpop.permute.xlu1 %866  ;;  %v879_v54 = vpop.permute.xlu0 %878 }
 0x322   : > { %v981_v12 = vmul.f32 %v867_v39, %v2048_v46  ;;  %v982_v10 = vmul.f32 %v867_v39, %v2049_v3  ;;  %v987_v55 = vmul.f32 %v879_v54, %v2050_v53  ;;  %v988_v7 = vmul.f32 %v879_v54, %v2051_v47  ;;  %v2073_v39 = vld [vmem:[#allocation9_spill] sm:$0xff]  ;;  %v2074_v46 = vld [vmem:[#allocation16_spill] sm:$0xff] }
 0x323   : > { %v2075_v3 = vld [vmem:[#allocation17_spill] sm:$0xff]  ;;  %v2076_v47 = vld [vmem:[#allocation12_spill] sm:$0xff] }
 0x324   : > { %1045 = vst [vmem:[%s1801_s27 + $0x70] sm:$0xff] %v981_v12  ;;  %1046 = vst [vmem:[%s1801_s27 + $0x78] sm:$0xff] %v982_v10 }
 0x325   : > { %1051 = vst [vmem:[%s1801_s27 + $0xa0] sm:$0xff] %v987_v55  ;;  %1052 = vst [vmem:[%s1801_s27 + $0xa8] sm:$0xff] %v988_v7  ;;  %v875_v37 = vpop.permute.xlu1 %874  ;;  %v887_v17 = vpop.permute.xlu0 %886 }
 0x326   : > { %v985_v61 = vmul.f32 %v875_v37, %v2052_v36  ;;  %v986_v35 = vmul.f32 %v875_v37, %v2053_v59  ;;  %v991_v0 = vmul.f32 %v887_v17, %v2054_v34  ;;  %v992_v45 = vmul.f32 %v887_v17, %v2055_v25  ;;  %v2077_v37 = vld [vmem:[#allocation13_spill] sm:$0xff]  ;;  %v2078_v36 = vld [vmem:[#allocation22_spill] sm:$0xff]  ;;  %v2079_v59 = vld [vmem:[#allocation23_spill] sm:$0xff] }
 0x327   : > { %v2080_v25 = vld [vmem:[#allocation18_spill] sm:$0xff] }
 0x328   : > { %1049 = vst [vmem:[%s1801_s27 + $0x90] sm:$0xff] %v985_v61  ;;  %1050 = vst [vmem:[%s1801_s27 + $0x98] sm:$0xff] %v986_v35 }
 0x329   : > { %1055 = vst [vmem:[%s1801_s27 + $0xc0] sm:$0xff] %v991_v0  ;;  %1056 = vst [vmem:[%s1801_s27 + $0xc8] sm:$0xff] %v992_v45  ;;  %v883_v60 = vpop.permute.xlu1 %882  ;;  %v895_v56 = vpop.permute.xlu0 %894 }
 0x32a   : > { %v989_v29 = vmul.f32 %v883_v60, %v2056_v42  ;;  %v990_v58 = vmul.f32 %v883_v60, %v2057_v6  ;;  %v995_v16 = vmul.f32 %v895_v56, %v2058_v41  ;;  %v996_v22 = vmul.f32 %v895_v56, %v2059_v44  ;;  %v2081_v60 = vld [vmem:[#allocation19_spill] sm:$0xff]  ;;  %v2082_v42 = vld [vmem:[#allocation30_spill] sm:$0xff] }
 0x32b   : > { %v2083_v6 = vld [vmem:[#allocation31_spill] sm:$0xff]  ;;  %v2084_v44 = vld [vmem:[#allocation26_spill] sm:$0xff] }
 0x32c   : > { %1053 = vst [vmem:[%s1801_s27 + $0xb0] sm:$0xff] %v989_v29  ;;  %1054 = vst [vmem:[%s1801_s27 + $0xb8] sm:$0xff] %v990_v58 }
 0x32d   : > { %1059 = vst [vmem:[%s1801_s27 + $0xe0] sm:$0xff] %v995_v16  ;;  %1060 = vst [vmem:[%s1801_s27 + $0xe8] sm:$0xff] %v996_v22  ;;  %v891_v62 = vpop.permute.xlu1 %890  ;;  %v906_v1 = vpop.permute.xlu0 %905 }
 0x32e   : > { %v993_v43 = vmul.f32 %v891_v62, %v2060_v49  ;;  %v994_v19 = vmul.f32 %v891_v62, %v2061_v13  ;;  %v999_v51 = vmul.f32 %v906_v1, %v2062_v31  ;;  %v1000_v48 = vmul.f32 %v906_v1, %v2063_v50  ;;  %v2085_v62 = vld [vmem:[#allocation27_spill] sm:$0xff]  ;;  %v2086_v49 = vld [vmem:[#allocation38_spill] sm:$0xff] }
 0x32f   : > { %v2087_v13 = vld [vmem:[#allocation39_spill] sm:$0xff]  ;;  %v2088_v50 = vld [vmem:[#allocation34_spill] sm:$0xff] }
 0x330   : > { %1057 = vst [vmem:[%s1801_s27 + $0xd0] sm:$0xff] %v993_v43  ;;  %1058 = vst [vmem:[%s1801_s27 + $0xd8] sm:$0xff] %v994_v19 }
 0x331   : > { %1063 = vst [vmem:[%s1801_s27 + $0x100] sm:$0xff] %v999_v51  ;;  %1064 = vst [vmem:[%s1801_s27 + $0x108] sm:$0xff] %v1000_v48  ;;  %v899_v52 = vpop.permute.xlu1 %898  ;;  %v914_v18 = vpop.permute.xlu0 %913 }
 0x332   : > { %v997_v33 = vmul.f32 %v899_v52, %v2064_v40  ;;  %v998_v8 = vmul.f32 %v899_v52, %v2065_v11  ;;  %v1003_v2 = vmul.f32 %v914_v18, %v2066_v9  ;;  %v1004_v57 = vmul.f32 %v914_v18, %v2067_v4  ;;  %v2089_v52 = vld [vmem:[#allocation35_spill] sm:$0xff]  ;;  %v2090_v40 = vld [vmem:[#allocation46_spill] sm:$0xff] }
 0x333   : > { %v2091_v11 = vld [vmem:[#allocation47_spill] sm:$0xff] }
 0x334   : > { %1061 = vst [vmem:[%s1801_s27 + $0xf0] sm:$0xff] %v997_v33  ;;  %1062 = vst [vmem:[%s1801_s27 + $0xf8] sm:$0xff] %v998_v8 }
 0x335   : > { %1067 = vst [vmem:[%s1801_s27 + $0x120] sm:$0xff] %v1003_v2  ;;  %1068 = vst [vmem:[%s1801_s27 + $0x128] sm:$0xff] %v1004_v57  ;;  %v910_v24 = vpop.permute.xlu1 %909  ;;  %v922_v14 = vpop.permute.xlu0 %921  ;;  %v2092_v2 = vld [vmem:[#allocation42_spill] sm:$0xff]  ;;  %v2093_v57 = vld [vmem:[#allocation43_spill] sm:$0xff] }
 0x336   : > { %v1001_v26 = vmul.f32 %v910_v24, %v2068_v15  ;;  %v1002_v32 = vmul.f32 %v910_v24, %v2069_v27  ;;  %v1007_v63 = vmul.f32 %v922_v14, %v2070_v5  ;;  %v1008_v20 = vmul.f32 %v922_v14, %v2071_v30  ;;  %v2094_v15 = vld [vmem:[#allocation50_spill] sm:$0xff]  ;;  %v2095_v27 = vld [vmem:[#allocation51_spill] sm:$0xff] }
 0x338   : > { %1065 = vst [vmem:[%s1801_s27 + $0x110] sm:$0xff] %v1001_v26  ;;  %1066 = vst [vmem:[%s1801_s27 + $0x118] sm:$0xff] %v1002_v32 }
 0x339   : > { %1071 = vst [vmem:[%s1801_s27 + $0x140] sm:$0xff] %v1007_v63  ;;  %1072 = vst [vmem:[%s1801_s27 + $0x148] sm:$0xff] %v1008_v20  ;;  %v918_v23 = vpop.permute.xlu1 %917  ;;  %v930_v21 = vpop.permute.xlu0 %929 }
 0x33a   : > { %v1005_v38 = vmul.f32 %v918_v23, %v2072_v28  ;;  %v1006_v54 = vmul.f32 %v918_v23, %v2073_v39  ;;  %v1011_v12 = vmul.f32 %v930_v21, %v2074_v46  ;;  %v1012_v10 = vmul.f32 %v930_v21, %v2075_v3 }
 0x33c   : > { %1069 = vst [vmem:[%s1801_s27 + $0x130] sm:$0xff] %v1005_v38  ;;  %1070 = vst [vmem:[%s1801_s27 + $0x138] sm:$0xff] %v1006_v54 }
 0x33d   : > { %1075 = vst [vmem:[%s1801_s27 + $0x160] sm:$0xff] %v1011_v12  ;;  %1076 = vst [vmem:[%s1801_s27 + $0x168] sm:$0xff] %v1012_v10  ;;  %v926_v53 = vpop.permute.xlu1 %925  ;;  %v938_v55 = vpop.permute.xlu0 %937 }
 0x33e   : > { %v1009_v7 = vmul.f32 %v926_v53, %v2076_v47  ;;  %v1010_v17 = vmul.f32 %v926_v53, %v2077_v37  ;;  %v1015_v61 = vmul.f32 %v938_v55, %v2078_v36  ;;  %v1016_v35 = vmul.f32 %v938_v55, %v2079_v59 }
 0x340   : > { %1073 = vst [vmem:[%s1801_s27 + $0x150] sm:$0xff] %v1009_v7  ;;  %1074 = vst [vmem:[%s1801_s27 + $0x158] sm:$0xff] %v1010_v17 }
 0x341   : > { %1079 = vst [vmem:[%s1801_s27 + $0x180] sm:$0xff] %v1015_v61  ;;  %1080 = vst [vmem:[%s1801_s27 + $0x188] sm:$0xff] %v1016_v35  ;;  %v934_v34 = vpop.permute.xlu1 %933  ;;  %v946_v0 = vpop.permute.xlu0 %945 }
 0x342   : > { %v1013_v45 = vmul.f32 %v934_v34, %v2080_v25  ;;  %v1014_v56 = vmul.f32 %v934_v34, %v2081_v60  ;;  %v1019_v29 = vmul.f32 %v946_v0, %v2082_v42  ;;  %v1020_v58 = vmul.f32 %v946_v0, %v2083_v6 }
 0x344   : > { %1077 = vst [vmem:[%s1801_s27 + $0x170] sm:$0xff] %v1013_v45  ;;  %1078 = vst [vmem:[%s1801_s27 + $0x178] sm:$0xff] %v1014_v56 }
 0x345   : > { %1083 = vst [vmem:[%s1801_s27 + $0x1a0] sm:$0xff] %v1019_v29  ;;  %1084 = vst [vmem:[%s1801_s27 + $0x1a8] sm:$0xff] %v1020_v58  ;;  %v942_v41 = vpop.permute.xlu1 %941  ;;  %v954_v16 = vpop.permute.xlu0 %953 }
 0x346   : > { %v1017_v22 = vmul.f32 %v942_v41, %v2084_v44  ;;  %v1018_v1 = vmul.f32 %v942_v41, %v2085_v62  ;;  %v1023_v43 = vmul.f32 %v954_v16, %v2086_v49  ;;  %v1024_v19 = vmul.f32 %v954_v16, %v2087_v13 }
 0x348   : > { %1081 = vst [vmem:[%s1801_s27 + $0x190] sm:$0xff] %v1017_v22  ;;  %1082 = vst [vmem:[%s1801_s27 + $0x198] sm:$0xff] %v1018_v1 }
 0x349   : > { %1087 = vst [vmem:[%s1801_s27 + $0x1c0] sm:$0xff] %v1023_v43  ;;  %1088 = vst [vmem:[%s1801_s27 + $0x1c8] sm:$0xff] %v1024_v19  ;;  %v950_v31 = vpop.permute.xlu1 %949  ;;  %v962_v51 = vpop.permute.xlu0 %961 }
 0x34a   : > { %v1021_v48 = vmul.f32 %v950_v31, %v2088_v50  ;;  %v1022_v18 = vmul.f32 %v950_v31, %v2089_v52  ;;  %v1027_v33 = vmul.f32 %v962_v51, %v2090_v40  ;;  %v1028_v8 = vmul.f32 %v962_v51, %v2091_v11 }
 0x34c   : > { %1085 = vst [vmem:[%s1801_s27 + $0x1b0] sm:$0xff] %v1021_v48  ;;  %1086 = vst [vmem:[%s1801_s27 + $0x1b8] sm:$0xff] %v1022_v18 }
 0x34d   : > { %1091 = vst [vmem:[%s1801_s27 + $0x1e0] sm:$0xff] %v1027_v33  ;;  %1092 = vst [vmem:[%s1801_s27 + $0x1e8] sm:$0xff] %v1028_v8  ;;  %v958_v9 = vpop.permute.xlu1 %957 }
 0x34e   : > { %v1025_v4 = vmul.f32 %v958_v9, %v2092_v2  ;;  %v1026_v24 = vmul.f32 %v958_v9, %v2093_v57 }
 0x350   : > { %1089 = vst [vmem:[%s1801_s27 + $0x1d0] sm:$0xff] %v1025_v4  ;;  %1090 = vst [vmem:[%s1801_s27 + $0x1d8] sm:$0xff] %v1026_v24 }
 0x351   : > { %v966_v14 = vpop.permute.xlu1 %965 }
 0x352   : > { %v1029_v26 = vmul.f32 %v966_v14, %v2094_v15  ;;  %v1030_v32 = vmul.f32 %v966_v14, %v2095_v27 }
 0x354   : > { %1093 = vst [vmem:[%s1801_s27 + $0x1f0] sm:$0xff] %v1029_v26  ;;  %1094 = vst [vmem:[%s1801_s27 + $0x1f8] sm:$0xff] %v1030_v32 }
 0x355 PF: > { %s15_s18 = sadd.s32 1, %s1286_s18  }
 0x356   : > { %p12_p4 = scmp.ge.s32.totalorder %s15_s18, 4  }
 0x358   :  { %14 = sbr.rel (!%p12_p4) target bundleno = 1 (0x1), region = 70 }

</bundles_post_ra>
